<compile_context>
chip_gen: v7x
topology: tpu7x:2x2x1
jax: 0.10.0
libtpu: 0.0.40
codegen_flags: <defaults>
</compile_context>

<pallas_src>
import functools

import jax
import jax.numpy as jnp
from jax.experimental import pallas as pl
from jax.experimental.pallas import tpu as pltpu


def _round_up(n, m):
    return ((n + m - 1) // m) * m


def actor_kernel(x_ref, w1_ref, w2_ref, w3_ref, b_ref, out_ref, *, h0, h1, n_out):
    """One batch tile, batch on lanes.

    Shapes: x_ref [num_inputs, tb]; w{i}_ref [out_i, in_i] (PyTorch layout);
    b_ref [max_h, 3] packed biases (one lane per layer); out_ref [n_out, tb].
    """
    x = x_ref[...]
    # Packed biases: lane 0 -> b1, lane 1 -> b2, lane 2 -> b3, each sliced as [h, 1]
    # so it broadcasts along the (batch) lane dimension.
    b1 = b_ref[0:h0, 0:1]
    b2 = b_ref[0:h1, 1:2]
    b3 = b_ref[0:n_out, 2:3]

    a1 = jnp.tanh(jnp.dot(w1_ref[...], x, preferred_element_type=jnp.float32) + b1)
    a2 = jnp.tanh(jnp.dot(w2_ref[...], a1, preferred_element_type=jnp.float32) + b2)
    z3 = jnp.dot(w3_ref[...], a2, preferred_element_type=jnp.float32) + b3
    out_ref[...] = jnp.tanh(z3).astype(out_ref.dtype)


def prepare_actor_params(params):
    """One-time prep (hoisted out of the per-step hot path): pack the three biases into
    a single [max_h, 3] f32 slab -> one constant DMA per call instead of three."""
    w1, w2, w3 = params["w1"], params["w2"], params["w3"]      # [out, in]
    b1, b2, b3 = params["b1"], params["b2"], params["b3"]
    maxh = max(b1.shape[0], b2.shape[0], b3.shape[0])
    pad = lambda b: jnp.pad(b, (0, maxh - b.shape[0]))
    b_pack = jnp.stack([pad(b1), pad(b2), pad(b3)], axis=1)    # [max_h, 3]
    return {
        "w1": w1.astype(jnp.float32),
        "w2": w2.astype(jnp.float32),
        "w3": w3.astype(jnp.float32),
        "b_pack": b_pack.astype(jnp.float32),
    }


def actor_forward(x, prepped, *, block_b=8192):
    """x: [B, num_inputs] f32. prepped: output of prepare_actor_params. Returns [B, n_out]."""
    w1, w2, w3, b_pack = prepped["w1"], prepped["w2"], prepped["w3"], prepped["b_pack"]
    B, num_inputs = x.shape
    h0, h1 = w1.shape[0], w2.shape[0]
    n_out = w3.shape[0]

    # Batch on lanes: tiny wrapper-side layout pass, lane-dense kernel dataflow.
    x_t = x.T                                                   # [num_inputs, B]

    # Tile selection: lane tiles must be a multiple of 128 unless they span the whole
    # batch.  Aim for >=2 tiles when B allows it (both v7x TCs busy); cap tile size so
    # very large batches still pipeline.
    if B <= 128:
        tb = B                                                  # single full-extent tile
    else:
        cap = max(128, _round_up(block_b, 128))
        tb = min(_round_up(pl.cdiv(B, 2), 128), cap)
    grid = (pl.cdiv(B, tb),)  # ragged last tile is fine: batch columns are independent

    kernel = functools.partial(actor_kernel, h0=h0, h1=h1, n_out=n_out)
    const = lambda a: pl.BlockSpec(a.shape, lambda i: (0, 0))   # VMEM-resident param

    out_t = pl.pallas_call(
        kernel,
        out_shape=jax.ShapeDtypeStruct((n_out, B), x.dtype),
        grid=grid,
        in_specs=[
            pl.BlockSpec((num_inputs, tb), lambda i: (0, i)),   # streamed per batch tile
            const(w1), const(w2), const(w3), const(b_pack),     # fetched once per call
        ],
        out_specs=pl.BlockSpec((n_out, tb), lambda i: (0, i)),  # lane-dense output slab
        compiler_params=pltpu.CompilerParams(
            dimension_semantics=("parallel",),  # shard batch tiles across TCs (v7x)
        ),
    )(x_t, w1, w2, w3, b_pack)
    return out_t.T                                              # [B, n_out]


def init_actor_params(key, num_inputs, hidden0, hidden1, num_outputs):
    """Mirror of the PyTorch module's init, weights in PyTorch [out, in] layout:
       linear1/linear2 weights ~ N(0, 0.02), mu weight ~ U(-0.003, 0.003),
       biases follow nn.Linear's default U(-1/sqrt(fan_in), 1/sqrt(fan_in))."""
    k1, k2, k3, kb1, kb2, kb3 = jax.random.split(key, 6)
    w1 = 0.02 * jax.random.normal(k1, (hidden0, num_inputs), jnp.float32)
    w2 = 0.02 * jax.random.normal(k2, (hidden1, hidden0), jnp.float32)
    w3 = jax.random.uniform(k3, (num_outputs, hidden1), jnp.float32, -0.003, 0.003)
    b1 = jax.random.uniform(kb1, (hidden0,), jnp.float32,
                            -1.0 / jnp.sqrt(num_inputs), 1.0 / jnp.sqrt(num_inputs))
    b2 = jax.random.uniform(kb2, (hidden1,), jnp.float32,
                            -1.0 / jnp.sqrt(hidden0), 1.0 / jnp.sqrt(hidden0))
    b3 = jax.random.uniform(kb3, (num_outputs,), jnp.float32,
                            -1.0 / jnp.sqrt(hidden1), 1.0 / jnp.sqrt(hidden1))
    return {"w1": w1, "b1": b1, "w2": w2, "b2": b2, "w3": w3, "b3": b3}


def actor_reference(x, p):
    a1 = jnp.tanh(x @ p["w1"].T + p["b1"])
    a2 = jnp.tanh(a1 @ p["w2"].T + p["b2"])
    return jnp.tanh(a2 @ p["w3"].T + p["b3"])


if __name__ == "__main__":
    key = jax.random.PRNGKey(0)
    kx1, kx2, kp = jax.random.split(key, 3)

    num_inputs = 16       # observation dim
    hidden0 = 32          # hidden_size_dim0
    hidden1 = 32          # hidden_size_dim1
    num_outputs = 4       # action_space

    params = init_actor_params(kp, num_inputs, hidden0, hidden1, num_outputs)
    prepped = prepare_actor_params(params)   # hoisted: done once, not per call

    # Case 1: B=300 -> 2 batch tiles of 256 lanes with a ragged last tile
    # (exercises the cdiv grid, megacore split, and lane-dense multi-tile path).
    x1 = jax.random.normal(kx1, (300, num_inputs), jnp.float32)
    mu1 = actor_forward(x1, prepped)
    jax.block_until_ready(mu1)
    ref1 = actor_reference(x1, params)
    assert mu1.shape == (300, num_outputs)
    assert jnp.allclose(mu1, ref1, atol=1e-4, rtol=1e-4), "mismatch vs reference (B=300)"

    # Case 2: tiny batch -> single full-extent tile (no 128-lane divisibility needed).
    x2 = jax.random.normal(kx2, (13, num_inputs), jnp.float32)
    mu2 = actor_forward(x2, prepped)
    jax.block_until_ready(mu2)
    ref2 = actor_reference(x2, params)
    assert mu2.shape == (13, num_outputs)
    assert jnp.allclose(mu2, ref2, atol=1e-4, rtol=1e-4), "mismatch vs reference (B=13)"

    print("KERNEL_OK")
</pallas_src>

<mosaic_0001>
module attributes {stable_mosaic.version = 11 : i64} {
  func.func @actor_kernel(%arg0: i32, %arg1: memref<16x256xf32, #tpu.memory_space<vmem>>, %arg2: memref<32x16xf32, #tpu.memory_space<vmem>>, %arg3: memref<32x32xf32, #tpu.memory_space<vmem>>, %arg4: memref<4x32xf32, #tpu.memory_space<vmem>>, %arg5: memref<32x3xf32, #tpu.memory_space<vmem>>, %arg6: memref<4x256xf32, #tpu.memory_space<vmem>>) attributes {dimension_semantics = [#tpu.dimension_semantics<parallel>], iteration_bounds = array<i64: 2>, scalar_prefetch = 0 : i64, scratch_operands = 0 : i64, tpu.core_type = #tpu.core_type<tc>, window_params = [{transform_indices = @transform_0, window_bounds = array<i64: 16, 256>}, {pipeline_mode = #tpu.pipeline_mode<synchronous>, transform_indices = @transform_1, window_bounds = array<i64: 32, 16>}, {pipeline_mode = #tpu.pipeline_mode<synchronous>, transform_indices = @transform_2, window_bounds = array<i64: 32, 32>}, {pipeline_mode = #tpu.pipeline_mode<synchronous>, transform_indices = @transform_3, window_bounds = array<i64: 4, 32>}, {pipeline_mode = #tpu.pipeline_mode<synchronous>, transform_indices = @transform_4, window_bounds = array<i64: 32, 3>}, {transform_indices = @transform_5, window_bounds = array<i64: 4, 256>}]} {
    %c0 = arith.constant 0 : index
    %c0_0 = arith.constant 0 : index
    %0 = vector.load %arg1[%c0, %c0_0] : memref<16x256xf32, #tpu.memory_space<vmem>>, vector<16x256xf32>
    %c0_1 = arith.constant 0 : index
    %c0_2 = arith.constant 0 : index
    %1 = vector.load %arg5[%c0_1, %c0_2] : memref<32x3xf32, #tpu.memory_space<vmem>>, vector<32x1xf32>
    %c0_3 = arith.constant 0 : index
    %c1 = arith.constant 1 : index
    %2 = vector.load %arg5[%c0_3, %c1] : memref<32x3xf32, #tpu.memory_space<vmem>>, vector<32x1xf32>
    %c0_4 = arith.constant 0 : index
    %c2 = arith.constant 2 : index
    %3 = vector.load %arg5[%c0_4, %c2] : memref<32x3xf32, #tpu.memory_space<vmem>>, vector<4x1xf32>
    %c0_5 = arith.constant 0 : index
    %c0_6 = arith.constant 0 : index
    %4 = vector.load %arg2[%c0_5, %c0_6] : memref<32x16xf32, #tpu.memory_space<vmem>>, vector<32x16xf32>
    %cst = arith.constant dense<0.000000e+00> : vector<32x256xf32>
    %5 = tpu.matmul %4, %0, %cst {dimension_numbers = #tpu.dot_dimension_numbers<[1], [0], [0], [1], [0, 0, 1, 1], [], []>} : vector<32x16xf32>, vector<16x256xf32>, vector<32x256xf32> -> vector<32x256xf32>
    %6 = vector.broadcast %1 : vector<32x1xf32> to vector<32x256xf32>
    %7 = arith.addf %5, %6 : vector<32x256xf32>
    %8 = math.tanh %7 : vector<32x256xf32>
    %c0_7 = arith.constant 0 : index
    %c0_8 = arith.constant 0 : index
    %9 = vector.load %arg3[%c0_7, %c0_8] : memref<32x32xf32, #tpu.memory_space<vmem>>, vector<32x32xf32>
    %cst_9 = arith.constant dense<0.000000e+00> : vector<32x256xf32>
    %10 = tpu.matmul %9, %8, %cst_9 {dimension_numbers = #tpu.dot_dimension_numbers<[1], [0], [0], [1], [0, 0, 1, 1], [], []>} : vector<32x32xf32>, vector<32x256xf32>, vector<32x256xf32> -> vector<32x256xf32>
    %11 = vector.broadcast %2 : vector<32x1xf32> to vector<32x256xf32>
    %12 = arith.addf %10, %11 : vector<32x256xf32>
    %13 = math.tanh %12 : vector<32x256xf32>
    %c0_10 = arith.constant 0 : index
    %c0_11 = arith.constant 0 : index
    %14 = vector.load %arg4[%c0_10, %c0_11] : memref<4x32xf32, #tpu.memory_space<vmem>>, vector<4x32xf32>
    %cst_12 = arith.constant dense<0.000000e+00> : vector<4x256xf32>
    %15 = tpu.matmul %14, %13, %cst_12 {dimension_numbers = #tpu.dot_dimension_numbers<[1], [0], [0], [1], [0, 0, 1, 1], [], []>} : vector<4x32xf32>, vector<32x256xf32>, vector<4x256xf32> -> vector<4x256xf32>
    %16 = vector.broadcast %3 : vector<4x1xf32> to vector<4x256xf32>
    %17 = arith.addf %15, %16 : vector<4x256xf32>
    %18 = math.tanh %17 : vector<4x256xf32>
    %c0_13 = arith.constant 0 : index
    %c0_14 = arith.constant 0 : index
    %19 = vector.load %arg6[%c0_13, %c0_14] : memref<4x256xf32, #tpu.memory_space<vmem>>, vector<4x256xf32>
    tpu.vector_store %arg6[%c0_13, %c0_14], %18 {strides = array<i32>} : memref<4x256xf32, #tpu.memory_space<vmem>>, vector<4x256xf32>,
    return
  }
  func.func @transform_0(%arg0: i32) -> (i32, i32) {
    %c0_i32 = arith.constant 0 : i32
    %c0_i32_0 = arith.constant 0 : i32
    return %c0_i32, %arg0 : i32, i32
  }
  func.func @transform_1(%arg0: i32) -> (i32, i32) {
    %c0_i32 = arith.constant 0 : i32
    %c0_i32_0 = arith.constant 0 : i32
    %c0_i32_1 = arith.constant 0 : i32
    return %c0_i32, %c0_i32_0 : i32, i32
  }
  func.func @transform_2(%arg0: i32) -> (i32, i32) {
    %c0_i32 = arith.constant 0 : i32
    %c0_i32_0 = arith.constant 0 : i32
    %c0_i32_1 = arith.constant 0 : i32
    return %c0_i32, %c0_i32_0 : i32, i32
  }
  func.func @transform_3(%arg0: i32) -> (i32, i32) {
    %c0_i32 = arith.constant 0 : i32
    %c0_i32_0 = arith.constant 0 : i32
    %c0_i32_1 = arith.constant 0 : i32
    return %c0_i32, %c0_i32_0 : i32, i32
  }
  func.func @transform_4(%arg0: i32) -> (i32, i32) {
    %c0_i32 = arith.constant 0 : i32
    %c0_i32_0 = arith.constant 0 : i32
    %c0_i32_1 = arith.constant 0 : i32
    return %c0_i32, %c0_i32_0 : i32, i32
  }
  func.func @transform_5(%arg0: i32) -> (i32, i32) {
    %c0_i32 = arith.constant 0 : i32
    %c0_i32_0 = arith.constant 0 : i32
    return %c0_i32, %arg0 : i32, i32
  }
}

</mosaic_0001>

<bundles_post_ra>
// kernel: tpu_custom_call.1
= control target key start
LH: loop header
LB: loop body
LE: loop exit
PB: predicated region body
PF: predicated region fallthrough
CT: control target
= control target key end

     0   :  { %s2162_s0 = inlined_call_operand.vmem [shape: f32[16,300], index: 0, kind: input, shape index: {}]   ;;  %s2163_s1 = inlined_call_operand.vmem [shape: f32[32,16], index: 1, kind: input, shape index: {}]   ;;  %s2164_s2 = inlined_call_operand.vmem [shape: f32[32,32], index: 2, kind: input, shape index: {}]   ;;  %s2165_s3 = inlined_call_operand.vmem [shape: f32[4,32], index: 3, kind: input, shape index: {}]   ;;  %s2166_s4 = inlined_call_operand.vmem [shape: f32[32,3], index: 4, kind: input, shape index: {}]   ;;  %s2167_s5 = inlined_call_operand.hbm [shape: f32[4,300], index: 5, kind: output, shape index: {}]  }
   0x1   :  { %2169 = sst [smem:[#allocation8_spill]] %s2162_s0 }
   0x2   :  { %10 = vsyncpa [#allocation4], 0 }
   0x3   :  { %12 = vsyncpa [#allocation4 + $0x1], 0  ;;  %s1698_s18 = smov 0   ;;  %s1700_s19 = smov 0  }
   0x4   :  { %s1702_s20 = smov 0   ;;  %s1704_s21 = smov 0  }
   0x5 LB: > { %2170 = sst [smem:[#allocation6_spill]] %s1591_s20  ;;  %s1719_s22 = sadd.s32 4294967295, %s1595_s21   ;;  %s1595_s21 = sphi %s1704_s21, %s2189_s21   ;;  %s1591_s20 = sphi %s1702_s20, %s2186_s20   ;;  %s1587_s19 = sphi %s1700_s19, %s2188_s19   ;;  %s1583_s18 = sphi %s1698_s18, %s2187_s18  }
   0x6   : > { %s1178_s23 = sadd.s32 4294967294, %s1595_s21   ;;  %s1723_s24 = sadd.s32 1, %s1595_s21  }
   0x7   : > { %s25_s25 = sadd.s32 1, %s1591_s20  ;;  %s22_s26 = ssub.s32 %s1595_s21, %s1723_s24 }
   0x8   : > { %p32_p0 = scmp.ne.s32.totalorder %s1591_s20, %s1587_s19  ;;  %p23_p1 = scmp.eq.s32.totalorder %s22_s26, 0 }
   0x9   : > { %p33_p2 = scmp.eq.s32.totalorder %s1595_s21, 0  ;;  %p146_p3 = scmp.eq.s32.totalorder %s1719_s22, 1 }
   0xa   : > { %p151_p4 = scmp.ne.s32.totalorder %s1587_s19, %s1583_s18  ;;  %p152_p7 = scmp.eq.s32.totalorder %s1178_s23, 1 }
   0xb   : > { %s1735_s27 = scalar_select %p23_p1, %s1591_s20, %s25_s25  }
   0xc   : > { %p34_p5 = por %p33_p2, %p32_p0  ;;  %p1737_p6 = por %p146_p3, %p32_p0 }
   0xd   : > { %2171 = sst [smem:[#allocation7_spill]] %s1735_s27  ;;  %p1741_p8 = por %p152_p7, %p151_p4 }
   0xe   : > { %p1180_p9 = scmp.ge.s32.totalorder %s1595_s21, 2 }
  0x10   : > { %180 = sbr.rel (%p1180_p9) target bundleno = 167 (0xa7), region = 32 }
  0x17   : > { %183 = sbr.rel (!%p34_p5) target bundleno = 167 (0xa7), region = 36  ;;  %s185_s30 = sand.u32 (%p34_p5), 1, %s1591_s20  }
  0x18   : > { %s1182_s6 = sshll.u32 (%p34_p5), %s1595_s21, 1  ;;  %s1181_s7 = sshll.u32 (%p34_p5), %s185_s30, 5 }
  0x19   : > { %s189_s8 = ssub.s32 (%p34_p5), 3, %s1182_s6  ;;  %s1229_s9 = sshll.u32 (%p34_p5), %s1595_s21, 4 }
  0x1a   : > { %p190_p10 = scmp.lt.s32.totalorder (%p34_p5), %s189_s8, 2  ;;  %s2174_s0 = sld [smem:[#allocation8_spill]] (%p34_p5) }
  0x1b   : > { %s1758_s15 = scalar_lea.vmem (%p34_p5), [#allocation2], %s1181_s7  }
  0x1e   : > { %s2191_s8 = smov (!%p190_p10, %s189_s8), 2 }
  0x1f   : > { %s1183_s13 = sshll.u32 %s2191_s8, 8  ;;  %s1756_s14 = sshll.u32 %s2191_s8, 3 }
  0x20   : > { %s1754_s12 = scalar_lea.vmem %s2174_s0, %s1229_s9   ;;  %p1187_p11 = scmp.eq.s32.totalorder %s1183_s13, 0 }
  0x21   : > { %p200_p12 = scmp.lt.u32.totalorder (!%p1187_p11), %s1756_s14, 8 }
  0x22   : > { %199 = sbr.rel (%p1187_p11) target bundleno = 167 (0xa7), region = 40 }
  0x29   : > { %203 = sbr.rel (%p200_p12) target bundleno = 158 (0x9e), region = 44  ;;  %s1762_s16 = sand.u32 (!%p200_p12), 7, %s1756_s14  }
  0x2a   : > { %p221_p13 = scmp.eq.s32.totalorder (!%p200_p12), %s1762_s16, 0  ;;  %p1188_p0 = scmp.ne.s32.totalorder (!%p200_p12), %s1762_s16, 0 }
  0x30   : > { %224 = sbr.rel (%p1188_p0) target bundleno = 101 (0x65), region = 59  ;;  %s225_s17 = sshrl.u32 (!%p1188_p0), %s1756_s14, 3 }
  0x31   : > { %s1769_s23 = sshrl.u32 (!%p1188_p0), %s225_s17, 5 }
  0x32   : > { %p1189_p1 = scmp.le.s32.totalorder (!%p1188_p0), %s1769_s23, 0 }
  0x37   : > { %1106 = sbr.rel (%p1189_p1) target bundleno = 81 (0x51), region = 158  ;;  %s2175_s25 = smov (!%p1189_p1), %s1758_s15 }
  0x38   : > { %s2176_s26 = smov (!%p1189_p1), %s1754_s12  ;;  %s1778_s30 = smov (!%p1189_p1), 0  }
  0x39   : > { %s1780_s6 = smov (!%p1189_p1), 0  }
  0x3e LB: >> { %v244_v0 = vld [vmem:[%s1603_s26 + $0x18] sm:$0xff]  ;;  %v246_v1 = vld [vmem:[%s1603_s26 + $0x20] sm:$0xff]  ;;  %v248_v2 = vld [vmem:[%s1603_s26 + $0x28] sm:$0xff]  ;;  %s366_s7 = sadd.s32 1, %s1607_s30  ;;  %s232_s6 = sadd.s32 1, %s1611_s6   ;;  %s1611_s6 = sphi %s1780_s6, %s232_s6   ;;  %s1607_s30 = sphi %s1778_s30, %s2179_s30   ;;  %s1603_s26 = sphi %s2176_s26, %s2178_s26   ;;  %s1599_s25 = sphi %s2175_s25, %s2177_s25  }
  0x3f   : >> { %v250_v3 = vld [vmem:[%s1603_s26 + $0x30] sm:$0xff]  ;;  %v252_v4 = vld [vmem:[%s1603_s26 + $0x38] sm:$0xff]  ;;  %v254_v5 = vld [vmem:[%s1603_s26 + $0x40] sm:$0xff]  ;;  %303 = vst [vmem:[%s1599_s25 + $0x10] sm:$0xff] %v244_v0  ;;  %p367_p2 = scmp.ge.s32.totalorder %s366_s7, %s1769_s23  ;;  %p231_p3 = scmp.ge.s32.totalorder %s232_s6, %s1769_s23 }
  0x40   : >> { %305 = vst [vmem:[%s1599_s25 + $0x18] sm:$0xff] %v246_v1  ;;  %307 = vst [vmem:[%s1599_s25 + $0x20] sm:$0xff] %v248_v2  ;;  %v256_v6 = vld [vmem:[%s1603_s26 + $0x48] sm:$0xff]  ;;  %v258_v7 = vld [vmem:[%s1603_s26 + $0x50] sm:$0xff] }
  0x41   : >> { %v260_v8 = vld [vmem:[%s1603_s26 + $0x58] sm:$0xff]  ;;  %309 = vst [vmem:[%s1599_s25 + $0x28] sm:$0xff] %v250_v3  ;;  %311 = vst [vmem:[%s1599_s25 + $0x30] sm:$0xff] %v252_v4  ;;  %v262_v9 = vld [vmem:[%s1603_s26 + $0x60] sm:$0xff]  ;;  %s2193_s7 = smov (%p367_p2, %s366_s7), 0 }
  0x42   : >> { %313 = vst [vmem:[%s1599_s25 + $0x38] sm:$0xff] %v254_v5  ;;  %v264_v10 = vld [vmem:[%s1603_s26 + $0x68] sm:$0xff]  ;;  %v266_v11 = vld [vmem:[%s1603_s26 + $0x70] sm:$0xff]  ;;  %315 = vst [vmem:[%s1599_s25 + $0x40] sm:$0xff] %v256_v6  ;;  %s1190_s8 = sshll.u32 %s2193_s7, 8  ;;  %s2179_s30 = smov %s2193_s7 }
  0x43   : >> { %317 = vst [vmem:[%s1599_s25 + $0x48] sm:$0xff] %v258_v7  ;;  %319 = vst [vmem:[%s1599_s25 + $0x50] sm:$0xff] %v260_v8  ;;  %v268_v12 = vld [vmem:[%s1603_s26 + $0x78] sm:$0xff]  ;;  %v270_v13 = vld [vmem:[%s1603_s26 + $0x80] sm:$0xff]  ;;  %s371_s9 = scalar_lea.vmem %s1754_s12, %s1190_s8   ;;  %s372_s10 = scalar_lea.vmem %s1758_s15, %s1190_s8 [#allocation2]  }
  0x44   : >> { %v272_v14 = vld [vmem:[%s1603_s26 + $0x88] sm:$0xff]  ;;  %321 = vst [vmem:[%s1599_s25 + $0x58] sm:$0xff] %v262_v9  ;;  %323 = vst [vmem:[%s1599_s25 + $0x60] sm:$0xff] %v264_v10  ;;  %v274_v15 = vld [vmem:[%s1603_s26 + $0x90] sm:$0xff] }
  0x45   : >> { %325 = vst [vmem:[%s1599_s25 + $0x68] sm:$0xff] %v266_v11  ;;  %v276_v16 = vld [vmem:[%s1603_s26 + $0x98] sm:$0xff]  ;;  %v278_v17 = vld [vmem:[%s1603_s26 + $0xa0] sm:$0xff]  ;;  %327 = vst [vmem:[%s1599_s25 + $0x70] sm:$0xff] %v268_v12 }
  0x46   : >> { %329 = vst [vmem:[%s1599_s25 + $0x78] sm:$0xff] %v270_v13  ;;  %331 = vst [vmem:[%s1599_s25 + $0x80] sm:$0xff] %v272_v14  ;;  %v280_v18 = vld [vmem:[%s1603_s26 + $0xa8] sm:$0xff]  ;;  %v282_v19 = vld [vmem:[%s1603_s26 + $0xb0] sm:$0xff] }
  0x47   : >> { %v284_v20 = vld [vmem:[%s1603_s26 + $0xb8] sm:$0xff]  ;;  %333 = vst [vmem:[%s1599_s25 + $0x88] sm:$0xff] %v274_v15  ;;  %335 = vst [vmem:[%s1599_s25 + $0x90] sm:$0xff] %v276_v16  ;;  %v286_v21 = vld [vmem:[%s1603_s26 + $0xc0] sm:$0xff] }
  0x48   : >> { %337 = vst [vmem:[%s1599_s25 + $0x98] sm:$0xff] %v278_v17  ;;  %v288_v22 = vld [vmem:[%s1603_s26 + $0xc8] sm:$0xff]  ;;  %v290_v23 = vld [vmem:[%s1603_s26 + $0xd0] sm:$0xff]  ;;  %339 = vst [vmem:[%s1599_s25 + $0xa0] sm:$0xff] %v280_v18 }
  0x49   : >> { %341 = vst [vmem:[%s1599_s25 + $0xa8] sm:$0xff] %v282_v19  ;;  %343 = vst [vmem:[%s1599_s25 + $0xb0] sm:$0xff] %v284_v20  ;;  %v292_v24 = vld [vmem:[%s1603_s26 + $0xd8] sm:$0xff]  ;;  %v294_v25 = vld [vmem:[%s1603_s26 + $0xe0] sm:$0xff] }
  0x4a   : >> { %v296_v26 = vld [vmem:[%s1603_s26 + $0xe8] sm:$0xff]  ;;  %345 = vst [vmem:[%s1599_s25 + $0xb8] sm:$0xff] %v286_v21  ;;  %347 = vst [vmem:[%s1599_s25 + $0xc0] sm:$0xff] %v288_v22  ;;  %v298_v27 = vld [vmem:[%s1603_s26 + $0xf0] sm:$0xff]  ;;  %234 = sbr.rel (!%p231_p3) target bundleno = 62 (0x3e), region = 164 }
  0x4b   : >> { %349 = vst [vmem:[%s1599_s25 + $0xc8] sm:$0xff] %v290_v23  ;;  %v300_v28 = vld [vmem:[%s1603_s26 + $0xf8] sm:$0xff]  ;;  %v238_v29 = vld [vmem:[%s1603_s26] sm:$0xff]  ;;  %351 = vst [vmem:[%s1599_s25 + $0xd0] sm:$0xff] %v292_v24 }
  0x4c   : >> { %353 = vst [vmem:[%s1599_s25 + $0xd8] sm:$0xff] %v294_v25  ;;  %355 = vst [vmem:[%s1599_s25 + $0xe0] sm:$0xff] %v296_v26  ;;  %v240_v30 = vld [vmem:[%s1603_s26 + $0x8] sm:$0xff]  ;;  %v360_v31 = vld [vmem:[%s1603_s26 + $0x100] sm:$0xff] }
  0x4d   : >> { %239 = vst [vmem:[%s1599_s25] sm:$0xff] %v238_v29  ;;  %357 = vst [vmem:[%s1599_s25 + $0xe8] sm:$0xff] %v298_v27  ;;  %v362_v32 = vld [vmem:[%s1603_s26 + $0x108] sm:$0xff]  ;;  %v364_v33 = vld [vmem:[%s1603_s26 + $0x110] sm:$0xff]  ;;  %s2178_s26 = smov %s371_s9 }
  0x4e   : >> { %359 = vst [vmem:[%s1599_s25 + $0xf0] sm:$0xff] %v300_v28  ;;  %241 = vst [vmem:[%s1599_s25 + $0x8] sm:$0xff] %v240_v30 }
  0x4f   : >> { %361 = vst [vmem:[%s1599_s25 + $0xf8] sm:$0xff] %v360_v31  ;;  %363 = vst [vmem:[%s1599_s25 + $0x100] sm:$0xff] %v362_v32 }
  0x50   : >> { %365 = vst [vmem:[%s1599_s25 + $0x108] sm:$0xff] %v364_v33  ;;  %s2177_s25 = smov %s372_s10 }
  0x51 PF: > { %s1882_s11 = sand.u32 31, %s225_s17   ;;  %s1230_s13 = sshll.u32 %s1769_s23, 12 }
  0x52   : > { %s377_s8 = sshra.s32 %s1230_s13, 4  ;;  %p1195_p4 = scmp.le.s32.totalorder %s1882_s11, 0 }
  0x53   : > { %s1886_s0 = scalar_lea.vmem %s1754_s12, %s377_s8   ;;  %s381_s10 = scalar_lea.vmem %s1758_s15, %s377_s8 [#allocation2]  }
  0x54   : > { %1120 = sbr.rel (%p1195_p4) target bundleno = 101 (0x65), region = 169  ;;  %s1613_s7 = smov (!%p1195_p4), %s381_s10  }
  0x55   : > { %s1617_s6 = smov (!%p1195_p4), %s1886_s0   ;;  %s1621_s9 = smov (!%p1195_p4), 0  }
  0x56   : > { %s1625_s25 = smov (!%p1195_p4), 0  }
  0x5b LB: >> { %v393_v34 = vld [vmem:[%s1619_s6] sm:$0xff]  ;;  %v395_v35 = vld [vmem:[%s1619_s6 + $0x18] sm:$0xff]  ;;  %s397_s17 = sadd.s32 1, %s1623_s9  ;;  %s387_s25 = sadd.s32 1, %s1627_s25   ;;  %s1627_s25 = sphi %s1625_s25, %s387_s25   ;;  %s1623_s9 = sphi %s1621_s9, %s1622_s9   ;;  %s1619_s6 = sphi %s1617_s6, %s402_s6   ;;  %s1615_s7 = sphi %s1613_s7, %s403_s7  }
  0x5c   : >> { %394 = vst [vmem:[%s1615_s7] sm:$0xff] %v393_v34  ;;  %396 = vst [vmem:[%s1615_s7 + $0x10] sm:$0xff] %v395_v35  ;;  %p398_p5 = scmp.ge.s32.totalorder %s397_s17, %s1882_s11  ;;  %p386_p7 = scmp.ge.s32.totalorder %s387_s25, %s1882_s11 }
  0x5e   : >> { %s2195_s17 = smov (%p398_p5, %s397_s17), 0  ;;  %389 = sbr.rel (!%p386_p7) target bundleno = 91 (0x5b), region = 175 }
  0x5f   : >> { %s1196_s23 = sshll.u32 %s2195_s17, 3  ;;  %s1622_s9 = smov %s2195_s17  }
  0x60   : >> { %s402_s6 = scalar_lea.vmem %s1886_s0, %s1196_s23   ;;  %s403_s7 = scalar_lea.vmem %s381_s10, %s1196_s23 [#allocation2]  }
  0x65 PF: > { %406 = sbr.rel (%p221_p13) target bundleno = 158 (0x9e), region = 77  ;;  %s408_s26 = ssub.s32 (!%p221_p13), %s1756_s14, %s1762_s16 }
  0x66   : > { %s412_s30 = sshrl.u32 (!%p221_p13), %s1756_s14, 3  ;;  %s1900_s13 = scalar_lea.vmem (!%p221_p13), %s1754_s12, %s408_s26 }
  0x67   : > { %s1903_s8 = scalar_lea.vmem (!%p221_p13), %s1758_s15, %s408_s26 [#allocation2]  ;;  %s1907_s7 = sshrl.u32 (!%p221_p13), %s412_s30, 5 }
  0x68   : > { %p1198_p10 = scmp.le.s32.totalorder (!%p221_p13), %s1907_s7, 0 }
  0x6c   : > { %1134 = sbr.rel (%p1198_p10) target bundleno = 134 (0x86), region = 180  ;;  %s2180_s0 = smov (!%p1198_p10), %s1758_s15 }
  0x6d   : > { %s2181_s11 = smov (!%p1198_p10), %s1754_s12  ;;  %s1916_s10 = smov (!%p1198_p10), 0  }
  0x6e   : > { %s1918_s6 = smov (!%p1198_p10), 0  }
  0x73 LB: >> { %v431_v36 = vld [vmem:[%s1635_s11 + $0x18] sm:$0xff]  ;;  %v433_v37 = vld [vmem:[%s1635_s11 + $0x20] sm:$0xff]  ;;  %v435_v38 = vld [vmem:[%s1635_s11 + $0x28] sm:$0xff]  ;;  %s553_s9 = sadd.s32 1, %s1639_s10  ;;  %s419_s6 = sadd.s32 1, %s1643_s6   ;;  %s1643_s6 = sphi %s1918_s6, %s419_s6   ;;  %s1639_s10 = sphi %s1916_s10, %s2184_s10   ;;  %s1635_s11 = sphi %s2181_s11, %s2183_s11   ;;  %s1631_s0 = sphi %s2180_s0, %s2182_s0  }
  0x74   : >> { %v437_v39 = vld [vmem:[%s1635_s11 + $0x30] sm:$0xff]  ;;  %v439_v40 = vld [vmem:[%s1635_s11 + $0x38] sm:$0xff]  ;;  %v441_v41 = vld [vmem:[%s1635_s11 + $0x40] sm:$0xff]  ;;  %490 = vst [vmem:[%s1631_s0 + $0x10] sm:$0xff] %v431_v36  ;;  %p554_p11 = scmp.ge.s32.totalorder %s553_s9, %s1907_s7  ;;  %p418_p12 = scmp.ge.s32.totalorder %s419_s6, %s1907_s7 }
  0x75   : >> { %492 = vst [vmem:[%s1631_s0 + $0x18] sm:$0xff] %v433_v37  ;;  %494 = vst [vmem:[%s1631_s0 + $0x20] sm:$0xff] %v435_v38  ;;  %v443_v42 = vld [vmem:[%s1635_s11 + $0x48] sm:$0xff]  ;;  %v445_v43 = vld [vmem:[%s1635_s11 + $0x50] sm:$0xff] }
  0x76   : >> { %v447_v44 = vld [vmem:[%s1635_s11 + $0x58] sm:$0xff]  ;;  %496 = vst [vmem:[%s1631_s0 + $0x28] sm:$0xff] %v437_v39  ;;  %498 = vst [vmem:[%s1631_s0 + $0x30] sm:$0xff] %v439_v40  ;;  %v449_v45 = vld [vmem:[%s1635_s11 + $0x60] sm:$0xff]  ;;  %s2197_s9 = smov (%p554_p11, %s553_s9), 0 }
  0x77   : >> { %500 = vst [vmem:[%s1631_s0 + $0x38] sm:$0xff] %v441_v41  ;;  %v451_v46 = vld [vmem:[%s1635_s11 + $0x68] sm:$0xff]  ;;  %v453_v47 = vld [vmem:[%s1635_s11 + $0x70] sm:$0xff]  ;;  %502 = vst [vmem:[%s1631_s0 + $0x40] sm:$0xff] %v443_v42  ;;  %s1199_s25 = sshll.u32 %s2197_s9, 8  ;;  %s2184_s10 = smov %s2197_s9 }
  0x78   : >> { %504 = vst [vmem:[%s1631_s0 + $0x48] sm:$0xff] %v445_v43  ;;  %506 = vst [vmem:[%s1631_s0 + $0x50] sm:$0xff] %v447_v44  ;;  %v455_v48 = vld [vmem:[%s1635_s11 + $0x78] sm:$0xff]  ;;  %v457_v49 = vld [vmem:[%s1635_s11 + $0x80] sm:$0xff]  ;;  %s558_s17 = scalar_lea.vmem %s1754_s12, %s1199_s25   ;;  %s559_s23 = scalar_lea.vmem %s1758_s15, %s1199_s25 [#allocation2]  }
  0x79   : >> { %v459_v50 = vld [vmem:[%s1635_s11 + $0x88] sm:$0xff]  ;;  %508 = vst [vmem:[%s1631_s0 + $0x58] sm:$0xff] %v449_v45  ;;  %510 = vst [vmem:[%s1631_s0 + $0x60] sm:$0xff] %v451_v46  ;;  %v461_v51 = vld [vmem:[%s1635_s11 + $0x90] sm:$0xff] }
  0x7a   : >> { %512 = vst [vmem:[%s1631_s0 + $0x68] sm:$0xff] %v453_v47  ;;  %v463_v52 = vld [vmem:[%s1635_s11 + $0x98] sm:$0xff]  ;;  %v465_v53 = vld [vmem:[%s1635_s11 + $0xa0] sm:$0xff]  ;;  %514 = vst [vmem:[%s1631_s0 + $0x70] sm:$0xff] %v455_v48 }
  0x7b   : >> { %516 = vst [vmem:[%s1631_s0 + $0x78] sm:$0xff] %v457_v49  ;;  %518 = vst [vmem:[%s1631_s0 + $0x80] sm:$0xff] %v459_v50  ;;  %v467_v54 = vld [vmem:[%s1635_s11 + $0xa8] sm:$0xff]  ;;  %v469_v55 = vld [vmem:[%s1635_s11 + $0xb0] sm:$0xff] }
  0x7c   : >> { %v471_v56 = vld [vmem:[%s1635_s11 + $0xb8] sm:$0xff]  ;;  %520 = vst [vmem:[%s1631_s0 + $0x88] sm:$0xff] %v461_v51  ;;  %522 = vst [vmem:[%s1631_s0 + $0x90] sm:$0xff] %v463_v52  ;;  %v473_v57 = vld [vmem:[%s1635_s11 + $0xc0] sm:$0xff] }
  0x7d   : >> { %524 = vst [vmem:[%s1631_s0 + $0x98] sm:$0xff] %v465_v53  ;;  %v475_v58 = vld [vmem:[%s1635_s11 + $0xc8] sm:$0xff]  ;;  %v477_v59 = vld [vmem:[%s1635_s11 + $0xd0] sm:$0xff]  ;;  %526 = vst [vmem:[%s1631_s0 + $0xa0] sm:$0xff] %v467_v54 }
  0x7e   : >> { %528 = vst [vmem:[%s1631_s0 + $0xa8] sm:$0xff] %v469_v55  ;;  %530 = vst [vmem:[%s1631_s0 + $0xb0] sm:$0xff] %v471_v56  ;;  %v479_v60 = vld [vmem:[%s1635_s11 + $0xd8] sm:$0xff]  ;;  %v481_v61 = vld [vmem:[%s1635_s11 + $0xe0] sm:$0xff] }
  0x7f   : >> { %v483_v62 = vld [vmem:[%s1635_s11 + $0xe8] sm:$0xff]  ;;  %532 = vst [vmem:[%s1631_s0 + $0xb8] sm:$0xff] %v473_v57  ;;  %534 = vst [vmem:[%s1631_s0 + $0xc0] sm:$0xff] %v475_v58  ;;  %v485_v63 = vld [vmem:[%s1635_s11 + $0xf0] sm:$0xff]  ;;  %421 = sbr.rel (!%p418_p12) target bundleno = 115 (0x73), region = 186 }
  0x80   : >> { %536 = vst [vmem:[%s1631_s0 + $0xc8] sm:$0xff] %v477_v59  ;;  %v487_v0 = vld [vmem:[%s1635_s11 + $0xf8] sm:$0xff]  ;;  %v425_v1 = vld [vmem:[%s1635_s11] sm:$0xff]  ;;  %538 = vst [vmem:[%s1631_s0 + $0xd0] sm:$0xff] %v479_v60 }
  0x81   : >> { %540 = vst [vmem:[%s1631_s0 + $0xd8] sm:$0xff] %v481_v61  ;;  %542 = vst [vmem:[%s1631_s0 + $0xe0] sm:$0xff] %v483_v62  ;;  %v427_v2 = vld [vmem:[%s1635_s11 + $0x8] sm:$0xff]  ;;  %v547_v3 = vld [vmem:[%s1635_s11 + $0x100] sm:$0xff] }
  0x82   : >> { %426 = vst [vmem:[%s1631_s0] sm:$0xff] %v425_v1  ;;  %544 = vst [vmem:[%s1631_s0 + $0xe8] sm:$0xff] %v485_v63  ;;  %v549_v4 = vld [vmem:[%s1635_s11 + $0x108] sm:$0xff]  ;;  %v551_v5 = vld [vmem:[%s1635_s11 + $0x110] sm:$0xff]  ;;  %s2183_s11 = smov %s558_s17 }
  0x83   : >> { %546 = vst [vmem:[%s1631_s0 + $0xf0] sm:$0xff] %v487_v0  ;;  %428 = vst [vmem:[%s1631_s0 + $0x8] sm:$0xff] %v427_v2 }
  0x84   : >> { %548 = vst [vmem:[%s1631_s0 + $0xf8] sm:$0xff] %v547_v3  ;;  %550 = vst [vmem:[%s1631_s0 + $0x100] sm:$0xff] %v549_v4 }
  0x85   : >> { %552 = vst [vmem:[%s1631_s0 + $0x108] sm:$0xff] %v551_v5  ;;  %s2182_s0 = smov %s559_s23 }
  0x86 PF: > { %s2020_s26 = sand.u32 31, %s412_s30   ;;  %s1232_s25 = sshll.u32 %s1907_s7, 12 }
  0x87   : > { %s564_s27 = sshra.s32 %s1232_s25, 4  ;;  %p1204_p13 = scmp.le.s32.totalorder %s2020_s26, 0 }
  0x88   : > { %s2024_s20 = scalar_lea.vmem %s1754_s12, %s564_s27   ;;  %s568_s23 = scalar_lea.vmem %s1758_s15, %s564_s27 [#allocation2]  }
  0x89   : > { %1148 = sbr.rel (%p1204_p13) target bundleno = 154 (0x9a), region = 191  ;;  %s1645_s9 = smov (!%p1204_p13), %s568_s23  }
  0x8a   : > { %s1649_s6 = smov (!%p1204_p13), %s2024_s20   ;;  %s1653_s17 = smov (!%p1204_p13), 0  }
  0x8b   : > { %s1657_s0 = smov (!%p1204_p13), 0  }
  0x90 LB: >> { %v580_v6 = vld [vmem:[%s1651_s6] sm:$0xff]  ;;  %v582_v7 = vld [vmem:[%s1651_s6 + $0x18] sm:$0xff]  ;;  %s584_s30 = sadd.s32 1, %s1655_s17  ;;  %s574_s0 = sadd.s32 1, %s1659_s0   ;;  %s1659_s0 = sphi %s1657_s0, %s574_s0   ;;  %s1655_s17 = sphi %s1653_s17, %s1654_s17   ;;  %s1651_s6 = sphi %s1649_s6, %s589_s6   ;;  %s1647_s9 = sphi %s1645_s9, %s590_s9  }
  0x91   : >> { %581 = vst [vmem:[%s1647_s9] sm:$0xff] %v580_v6  ;;  %583 = vst [vmem:[%s1647_s9 + $0x10] sm:$0xff] %v582_v7  ;;  %p585_p0 = scmp.ge.s32.totalorder %s584_s30, %s2020_s26  ;;  %p573_p1 = scmp.ge.s32.totalorder %s574_s0, %s2020_s26 }
  0x93   : >> { %s2199_s30 = smov (%p585_p0, %s584_s30), 0  ;;  %576 = sbr.rel (!%p573_p1) target bundleno = 144 (0x90), region = 197 }
  0x94   : >> { %s1205_s27 = sshll.u32 %s2199_s30, 3  ;;  %s1654_s17 = smov %s2199_s30  }
  0x95   : >> { %s589_s6 = scalar_lea.vmem %s2024_s20, %s1205_s27   ;;  %s590_s9 = scalar_lea.vmem %s568_s23, %s1205_s27 [#allocation2]  }
  0x9a PF: > { %s1661_s7 = smov 0  }
  0x9b   : > { %s591_s11 = sshllo.u32 %s1661_s7, %s1762_s16 }
  0x9c   : > { %v600_v8 = vld [vmem:[%s1900_s13] sm:%s591_s11]  ;;  %v602_v9 = vld [vmem:[%s1900_s13 + $0x18] sm:%s591_s11] }
  0x9d   : > { %601 = vst [vmem:[%s1903_s8] sm:%s591_s11] %v600_v8  ;;  %603 = vst [vmem:[%s1903_s8 + $0x10] sm:%s591_s11] %v602_v9 }
  0x9e PF: > { %p1207_p2 = scmp.ge.u32.totalorder %s1756_s14, 8 }
  0x9f   : > { %s1662_s10 = smov (!%p1207_p2), 0  }
  0xa0   : > { %206 = sbr.rel (%p1207_p2) target bundleno = 167 (0xa7), region = 48  ;;  %s207_s20 = sshllo.u32 (!%p1207_p2), %s1662_s10, %s1756_s14 }
  0xa1   : > { %v216_v10 = vld [vmem:[%s1754_s12] sm:%s207_s20] (!%p1207_p2)  ;;  %v218_v11 = vld [vmem:[%s1754_s12 + $0x18] sm:%s207_s20] (!%p1207_p2) }
  0xa2   : > { %217 = vst [vmem:[%s1758_s15] sm:%s207_s20] (!%p1207_p2), %v216_v10  ;;  %219 = vst [vmem:[%s1758_s15 + $0x10] sm:%s207_s20] (!%p1207_p2), %v218_v11 }
  0xa7 PF: > { %p1208_p3 = scmp.ge.s32.totalorder %s1595_s21, 1  ;;  %p606_p4 = scmp.lt.s32.totalorder %s1595_s21, 3 }
  0xa9   : > { %p607_p5 = pnand %p1208_p3, %p606_p4 }
  0xaa   : > { %s2046_s16 = sand.u32 (!%p607_p5), 1, %s1587_s19   ;;  %v1663_v12 = vmov (!%p607_p5), 0.0   ;;  %v654_v13 = vld [vmem:[%s2166_s4] sm:$0xff] (!%p607_p5)  ;;  %v1664_v14 = vmov (!%p607_p5), 0   ;;  %v656_v15 = vld [vmem:[%s2166_s4 + $0x10] sm:$0xff] (!%p607_p5)  ;;  %v655_v21 = vld [vmem:[%s2166_s4 + $0x8] sm:$0xff] (!%p607_p5) }
  0xab   : > { %610 = sbr.rel (%p607_p5) target bundleno = 924 (0x39c), region = 102  ;;  %s1209_s13 = sshll.u32 (!%p607_p5), %s2046_s16, 5  ;;  %760 = vmatprep.mubr.f32.mxu0 (!%p607_p5), %v1663_v12  ;;  %890 = vmatprep.mubr.f32.mxu1 (!%p607_p5), %v1663_v12  ;;  %v657_v23 = vld [vmem:[%s2166_s4 + $0x18] sm:$0xff] (!%p607_p5)  ;;  %v659_v24 = vld [vmem:[%s2163_s1] sm:$0xff] (!%p607_p5)  ;;  %vm683_vm0 = vcmask (!%p607_p5), 130048   ;;  %v660_v25 = vld [vmem:[%s2163_s1 + $0x8] sm:$0xff] (!%p607_p5) }
  0xac   : > { %1427 = vset.pattern.permute.xlu0 (!%p607_p5), %v1664_v14  ;;  %1428 = vset.pattern.permute.xlu1 (!%p607_p5), %v1664_v14  ;;  %s615_s26 = scalar_lea.vmem (!%p607_p5), [#allocation2], %s1209_s13  ;;  %v661_v26 = vld [vmem:[%s2163_s1 + $0x10] sm:$0xff] (!%p607_p5)  ;;  %v662_v27 = vld [vmem:[%s2163_s1 + $0x18] sm:$0xff] (!%p607_p5)  ;;  %v1665_v28 = vmov (!%p607_p5), 1   ;;  %v793_v61 = vld [vmem:[%s2164_s2] sm:$0xff] (!%p607_p5)  ;;  %vm813_vm1 = vcmask (!%p607_p5), 261120  }
  0xad   : > { %v651_v16 = vld [vmem:[%s615_s26 + $0x8] sm:$0xff] (!%p607_p5)  ;;  %v653_v17 = vld [vmem:[%s615_s26 + $0x18] sm:$0xff] (!%p607_p5)  ;;  %v650_v18 = vld [vmem:[%s615_s26] sm:$0xff] (!%p607_p5)  ;;  %665 = vperm.xlu0 (!%p607_p5), %1427, %v654_v13   ;;  %675 = vperm.xlu1 (!%p607_p5), %1428, %v656_v15   ;;  %v1666_v2 = vmov (!%p607_p5), 2   ;;  %s1210_s30 = sshll.u32 (!%p607_p5), %s2046_s16, 3  ;;  %s1011_s7 = scalar_lea.sflag (!%p607_p5), [#allocation4], %s2046_s16 }
  0xae   : > { %v1235_v19 = vpack.c.bf16 (!%p607_p5), %v653_v17, %v651_v16  ;;  %v652_v20 = vld [vmem:[%s615_s26 + $0x10] sm:$0xff] (!%p607_p5)  ;;  %v794_v62 = vld [vmem:[%s2164_s2 + $0x8] sm:$0xff] (!%p607_p5)  ;;  %v796_v0 = vld [vmem:[%s2164_s2 + $0x18] sm:$0xff] (!%p607_p5)  ;;  %s639_s27 = scalar_lea.vmem (!%p607_p5), [#allocation3], %s1210_s30 }
  0xaf   : > { %v1237_v22 = vpack.c.bf16 (!%p607_p5), %v652_v20, %v650_v18  ;;  %v795_v63 = vld [vmem:[%s2164_s2 + $0x10] sm:$0xff] (!%p607_p5)  ;;  %v658_v1 = vld [vmem:[%s2166_s4] sm:$0xf] (!%p607_p5) }
  0xb0   : > { %1236 = vmatprep.subr.bf16.mxu0 (!%p607_p5), %v1235_v19 }
  0xb1   : > { %1238 = vmatpush1.bf16.msra.mxu0 (!%p607_p5), %v1237_v22  ;;  %670 = vperm.xlu0 (!%p607_p5), %1427, %v655_v21  }
  0xb2   : > { %680 = vperm.xlu1 %1428, %v657_v23   ;;  %s1221_s11 = sshll.u32 (%p1737_p6), %s1719_s22, 1 }
  0xb3   : > { %s1019_s10 = ssub.s32 (%p1737_p6), 3, %s1221_s11 }
  0xb4   : > { %1211 = vmatmul.mubr.msk.f32.vlgmr.msra.gmra.mrb[0].mxu0 %vm683_vm0, %v659_v24  ;;  %p1020_p7 = scmp.lt.s32.totalorder (%p1737_p6), %s1019_s10, 2 }
  0xb5   : > { %766 = vmatprep.mubr.f32.mxu0 %v1663_v12  ;;  %1429 = vset.pattern.permute.xlu0 %v1665_v28 }
  0xb6   : > { %1430 = vset.pattern.permute.xlu1 %v1665_v28  ;;  %798 = vperm.xlu0 %1429, %v654_v13  }
  0xb7   : > { %802 = vperm.xlu1 %1430, %v655_v21  }
  0xb8   : > { %1212 = vmatmul.mubr.msk.f32.gmra.mrb[2].mxu0 %vm683_vm0, %v660_v25 }
  0xb9   : > { %772 = vmatprep.mubr.f32.mxu0 %v1663_v12 }
  0xba   : > { %810 = vperm.xlu0 %1429, %v657_v23  }
  0xbb   : > { %806 = vperm.xlu1 %1430, %v656_v15  }
  0xbc   : > { %1213 = vmatmul.mubr.msk.f32.gmra.mrb[4].mxu0 %vm683_vm0, %v661_v26 }
  0xbd   : > { %778 = vmatprep.mubr.f32.mxu0 %v1663_v12 }
  0xbe   : > { %1432 = vset.pattern.permute.xlu0 %v1666_v2 }
  0xbf   : > { %1431 = vset.pattern.permute.xlu1 %v1666_v2 }
  0xc0   : > { %1214 = vmatmul.mubr.msk.f32.gmra.mrb[6].mxu0 %vm683_vm0, %v662_v27  ;;  %926 = vperm.xlu1 %1431, %v658_v1  }
  0xc1   : > { %996 = vmatprep.mubr.f32.mxu0 %v1663_v12 }
 0x12c   : > { %v666_v29 = vpop.permute.xlu0 %665  ;;  %v676_v38 = vpop.permute.xlu1 %675 }
 0x130   : > { %v671_v34 = vpop.permute.xlu0 %670 }
 0x131   : > { %v681_v44 = vpop.permute.xlu1 %680 }
 0x135   : > { %v799_v3 = vpop.permute.xlu0 %798 }
 0x136   : > { %v803_v5 = vpop.permute.xlu1 %802 }
 0x139   : > { %v811_v18 = vpop.permute.xlu0 %810 }
 0x187   : > { %v762_v30 = vpop.f32.mrb[0].mxu0 }
 0x188   : > { %v763_v31 = vadd.f32 %v762_v30, %v666_v29  ;;  %v764_v32 = vpop.f32.mrb[1].mxu0 }
 0x189   : > { %v765_v33 = vadd.f32 %v764_v32, %v666_v29 }
 0x18a   : > { %1433 = vtanh.f32 %v763_v31 }
 0x18b   : > { %v768_v35 = vpop.f32.mrb[2].mxu0  ;;  %1435 = vtanh.f32 %v765_v33 }
 0x18c   : > { %v769_v36 = vadd.f32 %v768_v35, %v671_v34  ;;  %v770_v37 = vpop.f32.mrb[3].mxu0  ;;  %v923_v35 = vld [vmem:[%s2165_s3] sm:$0xf] }
 0x18d   : > { %v771_v39 = vadd.f32 %v770_v37, %v671_v34 }
 0x18e   : > { %1437 = vtanh.f32 %v769_v36 }
 0x18f   : > { %1439 = vtanh.f32 %v771_v39  ;;  %v774_v40 = vpop.f32.mrb[4].mxu0 }
 0x190   : > { %v775_v41 = vadd.f32 %v774_v40, %v676_v38  ;;  %v776_v42 = vpop.f32.mrb[5].mxu0 }
 0x191   : > { %v777_v43 = vadd.f32 %v776_v42, %v676_v38 }
 0x192   : > { %1441 = vtanh.f32 %v775_v41 }
 0x193   : > { %v780_v45 = vpop.f32.mrb[6].mxu0  ;;  %1443 = vtanh.f32 %v777_v43 }
 0x194   : > { %v781_v46 = vadd.f32 %v780_v45, %v681_v44  ;;  %v782_v47 = vpop.f32.mrb[7].mxu0  ;;  %v1434_v49 = vpop.eup %1433 }
 0x195   : > { %v783_v48 = vadd.f32 %v782_v47, %v681_v44  ;;  %v1436_v50 = vpop.eup %1435 }
 0x196   : > { %1445 = vtanh.f32 %v781_v46 }
 0x197   : > { %1447 = vtanh.f32 %v783_v48 }
 0x198   : > { %v1438_v51 = vpop.eup %1437 }
 0x199   : > { %v1440_v52 = vpop.eup %1439  ;;  %v1241_v53 = vpack.c.bf16 %v1438_v51, %v1434_v49 }
 0x19a   : > { %v1239_v54 = vpack.c.bf16 %v1440_v52, %v1436_v50 }
 0x19c   : > { %1240 = vmatprep.subr.bf16.mxu1 %v1239_v54  ;;  %v1442_v55 = vpop.eup %1441 }
 0x19d   : > { %1242 = vmatpush1.bf16.msra.mxu1 %v1241_v53  ;;  %v1444_v56 = vpop.eup %1443 }
 0x1a0   : > { %v1446_v57 = vpop.eup %1445 }
 0x1a1   : > { %v1448_v58 = vpop.eup %1447  ;;  %v1245_v59 = vpack.c.bf16 %v1446_v57, %v1442_v55 }
 0x1a2   : > { %v1243_v60 = vpack.c.bf16 %v1448_v58, %v1444_v56 }
 0x1a4   : > { %1244 = vmatprep.subr.bf16.mxu1 %v1243_v60 }
 0x1a5   : > { %1246 = vmatpush1.bf16.msra.mxu1 %v1245_v59 }
 0x1a8   : > { %1215 = vmatmul.mubr.msk.f32.vlgmr.msra.gmra.mrb[0].mxu1 %vm813_vm1, %v793_v61 }
 0x1a9   : > { %896 = vmatprep.mubr.f32.mxu1 %v1663_v12 }
 0x1ac   : > { %1216 = vmatmul.mubr.msk.f32.gmra.mrb[2].mxu1 %vm813_vm1, %v794_v62 }
 0x1ad   : > { %902 = vmatprep.mubr.f32.mxu1 %v1663_v12 }
 0x1b0   : > { %1217 = vmatmul.mubr.msk.f32.gmra.mrb[4].mxu1 %vm813_vm1, %v795_v63 }
 0x1b1   : > { %908 = vmatprep.mubr.f32.mxu1 %v1663_v12  ;;  %v807_v12 = vpop.permute.xlu1 %806 }
 0x1b4   : > { %1218 = vmatmul.mubr.msk.f32.gmra.mrb[6].mxu1 %vm813_vm1, %v796_v0 }
 0x1b5   : > { %v927_v36 = vpop.permute.xlu1 %926 }
 0x27b   : > { %v892_v4 = vpop.f32.mrb[0].mxu1 }
 0x27c   : > { %v893_v6 = vadd.f32 %v892_v4, %v799_v3  ;;  %v894_v7 = vpop.f32.mrb[1].mxu1 }
 0x27d   : > { %v895_v8 = vadd.f32 %v894_v7, %v799_v3 }
 0x27e   : > { %1449 = vtanh.f32 %v893_v6 }
 0x27f   : > { %v898_v9 = vpop.f32.mrb[2].mxu1  ;;  %1451 = vtanh.f32 %v895_v8 }
 0x280   : > { %v899_v10 = vadd.f32 %v898_v9, %v803_v5  ;;  %v900_v11 = vpop.f32.mrb[3].mxu1 }
 0x281   : > { %v901_v13 = vadd.f32 %v900_v11, %v803_v5 }
 0x282   : > { %1453 = vtanh.f32 %v899_v10 }
 0x283   : > { %1455 = vtanh.f32 %v901_v13  ;;  %v904_v14 = vpop.f32.mrb[4].mxu1 }
 0x284   : > { %v905_v15 = vadd.f32 %v904_v14, %v807_v12  ;;  %v906_v16 = vpop.f32.mrb[5].mxu1 }
 0x285   : > { %v907_v17 = vadd.f32 %v906_v16, %v807_v12 }
 0x286   : > { %1457 = vtanh.f32 %v905_v15 }
 0x287   : > { %v910_v19 = vpop.f32.mrb[6].mxu1  ;;  %1459 = vtanh.f32 %v907_v17 }
 0x288   : > { %v911_v20 = vadd.f32 %v910_v19, %v811_v18  ;;  %v912_v21 = vpop.f32.mrb[7].mxu1  ;;  %v1450_v23 = vpop.eup %1449 }
 0x289   : > { %v913_v22 = vadd.f32 %v912_v21, %v811_v18  ;;  %v1452_v24 = vpop.eup %1451 }
 0x28a   : > { %1461 = vtanh.f32 %v911_v20 }
 0x28b   : > { %1463 = vtanh.f32 %v913_v22 }
 0x28c   : > { %v1454_v25 = vpop.eup %1453 }
 0x28d   : > { %v1456_v26 = vpop.eup %1455  ;;  %v1249_v27 = vpack.c.bf16 %v1454_v25, %v1450_v23 }
 0x28e   : > { %v1247_v28 = vpack.c.bf16 %v1456_v26, %v1452_v24 }
 0x290   : > { %1248 = vmatprep.subr.bf16.mxu0 %v1247_v28  ;;  %v1458_v29 = vpop.eup %1457 }
 0x291   : > { %1250 = vmatpush1.bf16.msra.mxu0 %v1249_v27  ;;  %v1460_v30 = vpop.eup %1459 }
 0x294   : > { %v1462_v31 = vpop.eup %1461 }
 0x295   : > { %v1464_v32 = vpop.eup %1463  ;;  %v1253_v33 = vpack.c.bf16 %v1462_v31, %v1458_v29 }
 0x296   : > { %v1251_v34 = vpack.c.bf16 %v1464_v32, %v1460_v30 }
 0x298   : > { %1252 = vmatprep.subr.bf16.mxu0 %v1251_v34 }
 0x299   : > { %1254 = vmatpush1.bf16.msra.mxu0 %v1253_v33 }
 0x29c   : > { %1219 = vmatmul.mubr.msk.f32.vlgmr.msra.gmra.mrb[8].mxu0 %vm813_vm1, %v923_v35 }
 0x36f   : > { %v998_v37 = vpop.f32.mrb[8].mxu0 }
 0x370   : > { %v999_v38 = vadd.f32 %v998_v37, %v927_v36  ;;  %v1000_v39 = vpop.f32.mrb[9].mxu0 }
 0x371   : > { %v1001_v40 = vadd.f32 %v1000_v39, %v927_v36 }
 0x372   : > { %1465 = vtanh.f32 %v999_v38 }
 0x373   : > { %1467 = vtanh.f32 %v1001_v40 }
 0x37a   : > { %1017 = sbr.rel (!%p1737_p6) target bundleno = 924 (0x39c), region = 110 }
 0x37c   : > { %v1466_v41 = vpop.eup %1465 }
 0x37d   : > { %v1468_v42 = vpop.eup %1467 }
 0x37e   : > { %v1007_v43 = vcombine.low %v1466_v41, %v1468_v42 }
 0x380   : > { %1009 = vst [vmem:[%s639_s27] sm:$0xff] %v1007_v43 }
 0x381   : > { %s2201_s10 = smov (!%p1020_p7, %s1019_s10), 2 }
 0x382   : > { %s2110_s20 = sshll.u32 %s2201_s10, 6 }
 0x383   : > { %s1024_s13 = ssub.s32 128, %s2110_s20 }
 0x384   : > { %1025 = vsyncadd %s1011_s7, %s1024_s13  ;;  %p1223_p10 = scmp.ne.s32.totalorder %s2110_s20, 0  ;;  %s1234_s12 = sshll.u32 %s1719_s22, 7 }
 0x385   : > { %s2120_s15 = scalar_lea.hbm %s2167_s5, %s1234_s12  ;;  %s1031_s8 = sshll.u32 %s639_s27, 4  ;;  %s1032_s8 = int_to_ptr.vmem [resolvable:$true] %s1031_s8 }
 0x386   : > { %s1469_s26 = scalar_lea.vmem %s1032_s8, %s2110_s20  ;;  %s1667_s25 = smov [#allocation3]  }
 0x387   : > { %p1470_p6 = scmp.ne.s32.totalorder %s1032_s8, %s1469_s26  ;;  %s1473_s23 = sshll.u32 %s1667_s25, 4  ;;  %s1474_s23 = int_to_ptr.vmem [resolvable:$false] %s1473_s23 }
 0x388   : > { %s1475_s9 = scalar_lea.vmem %s1474_s23, 256  ;;  %p1476_p13 = scmp.lt.s32.totalorder %s1032_s8, %s1474_s23 }
 0x389   : > { %p1471_p11 = pnand %p1470_p6, %p1223_p10  ;;  %p1477_p0 = scmp.lt.s32.totalorder %s1475_s9, %s1469_s26 }
 0x38b   : > { %p1472_p12 = pneg %p1471_p11  ;;  %p1478_p1 = por %p1477_p0, %p1476_p13 }
 0x38d   : > { %p1479_p2 = pnand %p1478_p1, %p1472_p12 }
 0x38f   : > { %1482 = shalt.err (!%p1479_p2)
}
 0x390   : > { %s1483_s22 = scalar_lea.hbm %s2120_s15, %s2110_s20  ;;  %s1487_s0 = scalar_lea.hbm %s2167_s5, 192 }
 0x391   : > { %p1484_p3 = scmp.ne.s32.totalorder %s2120_s15, %s1483_s22  ;;  %p1488_p7 = scmp.lt.u32.totalorder %s2120_s15, %s2167_s5 }
 0x392   : > { %p1489_p6 = scmp.lt.u32.totalorder %s1487_s0, %s1483_s22  ;;  %p1491_p12 = scmp.lt.u32.totalorder %s1483_s22, %s2120_s15 }
 0x393   : > { %p1485_p4 = pnand %p1484_p3, %p1223_p10 }
 0x394   : > { %p1490_p11 = por %p1489_p6, %p1488_p7 }
 0x395   : > { %p1486_p5 = pneg %p1485_p4 }
 0x396   : > { %p1492_p13 = por %p1491_p12, %p1490_p11 }
 0x398   : > { %p1493_p0 = pnand %p1492_p13, %p1486_p5 }
 0x39a   : > { %1496 = shalt.err (!%p1493_p0)
}
 0x39b   : > { %1034 = dma.vmem_to_hbm [thread:$0]  (%p1223_p10), %s1032_s8, %s2110_s20, %s2120_s15, %s1011_s7  }
 0x39c PF: > { %s1043_s11 = sand.u32 1, %s1583_s18   ;;  %p1257_p1 = pnand %p1180_p9, %p1741_p8 }
 0x39d   : > { %s1044_s10 = scalar_lea.sflag [#allocation4], %s1043_s11 }
 0x39e   : > { %1578 = dma.done.wait (!%p1257_p1), %s1044_s10, 128  }
 0x39f   : > { %1580 = vsyncadd (!%p1257_p1), %s1044_s10, 4294967168  ;;  %s2185_s13 = sld [smem:[#allocation6_spill]]  ;;  %s2186_s20 = sld [smem:[#allocation7_spill]] }
 0x3a0   : > { %p15_p2 = scmp.ge.s32.totalorder %s1723_s24, 4   ;;  %s2187_s18 = smov %s1587_s19 }
 0x3a1   : > { %s2189_s21 = smov %s1723_s24 }
 0x3a2   :  { %17 = sbr.rel (!%p15_p2) target bundleno = 5 (0x5), region = 208 }
 0x3a5   : > { %s2188_s19 = smov %s2185_s13 }
 0x3a9   :  { %1049 = vsyncpa [#allocation4], 1 }
 0x3aa   :  { %1051 = vsyncpa [#allocation4 + $0x1], 1 }

</bundles_post_ra>
